<compile_context>
chip_gen: v7x
topology: tpu7x:2x2x1
jax: 0.10.0
libtpu: 0.0.40
codegen_flags: <defaults>
</compile_context>

<pallas_src>
import functools

import jax
import jax.numpy as jnp
from jax.experimental import pallas as pl
from jax.experimental.pallas import tpu as pltpu


def _mpnn_kernel(x_ref, w_ref, b_ref, o_ref, *, num_layers, num_channels,
                 use_bf16):
    # x_ref: (Bt, C, E)   node features for Bt batch elements
    # w_ref: (L, E, H)    per-layer GCN weights (applied as x @ W)
    # b_ref: (L, 1, H)    per-layer biases
    # o_ref: (Bt, H)      shared (identical-across-channels) row per batch elem
    inv_c = 1.0 / num_channels

    def dot(a, w):
        if use_bf16:
            a = a.astype(jnp.bfloat16)
            w = w.astype(jnp.bfloat16)
        return jnp.dot(a, w, preferred_element_type=jnp.float32)

    # Complete graph + self loops => D^-1/2 (A+I) D^-1/2 == (1/C) * ones(C, C):
    # propagation is a channel mean.  By linearity mean_c(x_c @ W) ==
    # mean_c(x_c) @ W, so reduce over channels BEFORE the layer-1 matmul.
    x_mean = jnp.sum(x_ref[...], axis=1) * inv_c                      # (Bt, E)
    h = jnp.maximum(dot(x_mean, w_ref[0]) + b_ref[0], 0.0)            # (Bt, H)

    # After layer 1 every channel row within a batch element is identical, so
    # the row-stochastic (1/C)*ones propagation is the identity on the shared
    # row; layers 2..L operate on one row per batch element.
    # NOTE: valid ONLY because this module always builds the complete graph.
    for l in range(1, num_layers):   # L is small (3): static unroll is fine.
        h = jnp.maximum(dot(h, w_ref[l]) + b_ref[l], 0.0)

    o_ref[...] = h.astype(o_ref.dtype)


def _pick_block_batch(batch):
    # After the channel pre-reduce, the MXU M dimension is Bt itself.  The
    # grid is a serial loop on v5e/v6e (~0.35 us / step), so only split when
    # each step still carries a full MXU's worth of rows; otherwise run a
    # single grid step with no padding.
    if batch <= 512:
        return batch
    return 256   # multiple of 8 sublanes, native MXU M on v6e/v7x


def mpnn_conv_forward(embeddings, weights, biases, *, block_batch=None,
                      use_bf16=False):
    B, C, E = embeddings.shape
    L, E_w, H = weights.shape
    assert E_w == E
    # Layers 2..L apply an (E, H) weight to an H-wide activation; the stacked
    # GCNConv module itself only composes when E == H (module default 64/64).
    assert L == 1 or E == H, "MPNN_CONV stacking requires embedding_dim == hidden_dim"

    Bt = block_batch if block_batch is not None else _pick_block_batch(B)
    num_steps = pl.cdiv(B, Bt)
    B_pad = num_steps * Bt
    x = embeddings
    if B_pad != B:
        x = jnp.pad(x, ((0, B_pad - B), (0, 0), (0, 0)))

    # Advisory cost of the simplified computation actually performed.
    cost = pl.CostEstimate(
        flops=B_pad * C * E                    # channel pre-reduce
        + 2 * B_pad * E * H                    # layer-1 matmul (post-reduce)
        + 2 * B_pad * H * H * max(L - 1, 0),   # layers 2..L
        transcendentals=0,
        bytes_accessed=4 * (B_pad * C * E + L * E * H + L * H + B_pad * H),
    )

    kernel = functools.partial(_mpnn_kernel, num_layers=L, num_channels=C,
                               use_bf16=use_bf16)

    # TODO(synk): at real E/H (1-2K) on v7x (64 MiB VMEM / 32 MiB scoped
    # default), single-buffer the grid-invariant (L, E, H) weights
    # (memory_space=pl.ANY + one-time make_async_copy, or add a K grid axis
    # with an f32 accumulator) and set vmem_limit_bytes explicitly; at the
    # toy sizes here the default double-buffered weight block is negligible.
    out_rows = pl.pallas_call(
        kernel,
        out_shape=jax.ShapeDtypeStruct((B_pad, H), jnp.float32),
        grid_spec=pltpu.PrefetchScalarGridSpec(
            num_scalar_prefetch=0,
            grid=(num_steps,),
            in_specs=[
                pl.BlockSpec((Bt, C, E), lambda i: (i, 0, 0)),
                pl.BlockSpec((L, E, H), lambda i: (0, 0, 0)),
                pl.BlockSpec((L, 1, H), lambda i: (0, 0, 0)),
            ],
            out_specs=pl.BlockSpec((Bt, H), lambda i: (i, 0)),
        ),
        compiler_params=pltpu.CompilerParams(
            dimension_semantics=(
                ("parallel",) if num_steps > 1 else ("arbitrary",))),
        cost_estimate=cost,
    )(x, weights, biases)

    # Channel broadcast done in the wrapper: C x less kernel HBM writeback and
    # no in-kernel cross-lane replication.
    return jnp.broadcast_to(out_rows[:B, None, :], (B, C, H))


def gcn_normalized_adjacency(num_channels):
    # edge_index = combinations(arange(C), r=2) in both directions
    # => complete graph without self loops; GCNConv adds self loops and
    # symmetric-normalizes.
    a = jnp.ones((num_channels, num_channels), jnp.float32) - jnp.eye(
        num_channels, dtype=jnp.float32)
    a_hat = a + jnp.eye(num_channels, dtype=jnp.float32)
    deg = a_hat.sum(axis=1)
    d_inv_sqrt = deg ** -0.5
    return d_inv_sqrt[:, None] * a_hat * d_inv_sqrt[None, :]


def reference_forward(embeddings, weights, biases, adj_norm):
    # Pure-JAX reference mirroring the PyTorch per-batch loop (explicit
    # normalized-adjacency matmul, so it also validates the rank-1 / pre-mean
    # simplifications used inside the kernel).
    B = embeddings.shape[0]
    L = weights.shape[0]
    outs = []
    for i in range(B):
        x = embeddings[i]
        for l in range(L):
            x = adj_norm @ (x @ weights[l]) + biases[l]
            x = jnp.maximum(x, 0.0)
        outs.append(x)
    return jnp.stack(outs)


if __name__ == "__main__":
    batch_size = 2
    num_channels = 8
    embedding_dim = 64
    hidden_dim = 64
    num_layers = 3

    key = jax.random.PRNGKey(0)
    k_x, k_w, k_b = jax.random.split(key, 3)

    embeddings = jax.random.normal(
        k_x, (batch_size, num_channels, embedding_dim), jnp.float32)

    # Deterministic parameter init (Glorot-ish scale for weights, small biases).
    scale = (6.0 / (embedding_dim + hidden_dim)) ** 0.5
    weights = scale * jax.random.uniform(
        k_w, (num_layers, embedding_dim, hidden_dim), jnp.float32,
        minval=-1.0, maxval=1.0)
    biases = 0.01 * jax.random.normal(
        k_b, (num_layers, 1, hidden_dim), jnp.float32)

    out = mpnn_conv_forward(embeddings, weights, biases)
    out = jax.block_until_ready(out)

    adj_norm = gcn_normalized_adjacency(num_channels)
    ref = reference_forward(embeddings, weights, biases, adj_norm)
    assert out.shape == (batch_size, num_channels, hidden_dim)
    assert jnp.allclose(out, ref, atol=1e-4, rtol=1e-4)

    print("KERNEL_OK")
</pallas_src>

<mosaic_0001>
module attributes {stable_mosaic.version = 11 : i64} {
  func.func @_mpnn_kernel(%arg0: i32, %arg1: memref<2x8x64xf32, #tpu.memory_space<vmem>>, %arg2: memref<3x64x64xf32, #tpu.memory_space<vmem>>, %arg3: memref<3x1x64xf32, #tpu.memory_space<vmem>>, %arg4: memref<2x64xf32, #tpu.memory_space<vmem>>) attributes {dimension_semantics = [#tpu.dimension_semantics<arbitrary>], iteration_bounds = array<i64: 1>, scalar_prefetch = 0 : i64, scratch_operands = 0 : i64, tpu.core_type = #tpu.core_type<tc>, window_params = [{transform_indices = @transform_0, window_bounds = array<i64: 2, 8, 64>}, {pipeline_mode = #tpu.pipeline_mode<synchronous>, transform_indices = @transform_1, window_bounds = array<i64: 3, 64, 64>}, {pipeline_mode = #tpu.pipeline_mode<synchronous>, transform_indices = @transform_2, window_bounds = array<i64: 3, 1, 64>}, {transform_indices = @transform_3, window_bounds = array<i64: 2, 64>}]} {
    %c0 = arith.constant 0 : index
    %c0_0 = arith.constant 0 : index
    %c0_1 = arith.constant 0 : index
    %0 = vector.load %arg1[%c0, %c0_0, %c0_1] : memref<2x8x64xf32, #tpu.memory_space<vmem>>, vector<2x8x64xf32>
    %cst = arith.constant dense<0.000000e+00> : vector<2x64xf32>
    %1 = vector.multi_reduction <add>, %0, %cst [1] : vector<2x8x64xf32> to vector<2x64xf32>
    %cst_2 = arith.constant 1.250000e-01 : f32
    %2 = vector.broadcast %cst_2 : f32 to vector<2x64xf32>
    %3 = arith.mulf %1, %2 : vector<2x64xf32>
    %c0_3 = arith.constant 0 : index
    %c0_4 = arith.constant 0 : index
    %c0_5 = arith.constant 0 : index
    %4 = vector.load %arg2[%c0_3, %c0_4, %c0_5] : memref<3x64x64xf32, #tpu.memory_space<vmem>>, vector<1x64x64xf32>
    %5 = vector.shape_cast %4 : vector<1x64x64xf32> to vector<64x64xf32>
    %cst_6 = arith.constant dense<0.000000e+00> : vector<2x64xf32>
    %6 = tpu.matmul %3, %5, %cst_6 {dimension_numbers = #tpu.dot_dimension_numbers<[1], [0], [0], [1], [0, 0, 1, 1], [], []>} : vector<2x64xf32>, vector<64x64xf32>, vector<2x64xf32> -> vector<2x64xf32>
    %c0_7 = arith.constant 0 : index
    %c0_8 = arith.constant 0 : index
    %c0_9 = arith.constant 0 : index
    %7 = vector.load %arg3[%c0_7, %c0_8, %c0_9] : memref<3x1x64xf32, #tpu.memory_space<vmem>>, vector<1x1x64xf32>
    %8 = vector.shape_cast %7 : vector<1x1x64xf32> to vector<1x64xf32>
    %9 = vector.broadcast %8 : vector<1x64xf32> to vector<2x64xf32>
    %10 = arith.addf %6, %9 : vector<2x64xf32>
    %cst_10 = arith.constant 0.000000e+00 : f32
    %11 = vector.broadcast %cst_10 : f32 to vector<2x64xf32>
    %12 = arith.maximumf %10, %11 : vector<2x64xf32>
    %c1 = arith.constant 1 : index
    %c0_11 = arith.constant 0 : index
    %c0_12 = arith.constant 0 : index
    %13 = vector.load %arg2[%c1, %c0_11, %c0_12] : memref<3x64x64xf32, #tpu.memory_space<vmem>>, vector<1x64x64xf32>
    %14 = vector.shape_cast %13 : vector<1x64x64xf32> to vector<64x64xf32>
    %cst_13 = arith.constant dense<0.000000e+00> : vector<2x64xf32>
    %15 = tpu.matmul %12, %14, %cst_13 {dimension_numbers = #tpu.dot_dimension_numbers<[1], [0], [0], [1], [0, 0, 1, 1], [], []>} : vector<2x64xf32>, vector<64x64xf32>, vector<2x64xf32> -> vector<2x64xf32>
    %c1_14 = arith.constant 1 : index
    %c0_15 = arith.constant 0 : index
    %c0_16 = arith.constant 0 : index
    %16 = vector.load %arg3[%c1_14, %c0_15, %c0_16] : memref<3x1x64xf32, #tpu.memory_space<vmem>>, vector<1x1x64xf32>
    %17 = vector.shape_cast %16 : vector<1x1x64xf32> to vector<1x64xf32>
    %18 = vector.broadcast %17 : vector<1x64xf32> to vector<2x64xf32>
    %19 = arith.addf %15, %18 : vector<2x64xf32>
    %cst_17 = arith.constant 0.000000e+00 : f32
    %20 = vector.broadcast %cst_17 : f32 to vector<2x64xf32>
    %21 = arith.maximumf %19, %20 : vector<2x64xf32>
    %c2 = arith.constant 2 : index
    %c0_18 = arith.constant 0 : index
    %c0_19 = arith.constant 0 : index
    %22 = vector.load %arg2[%c2, %c0_18, %c0_19] : memref<3x64x64xf32, #tpu.memory_space<vmem>>, vector<1x64x64xf32>
    %23 = vector.shape_cast %22 : vector<1x64x64xf32> to vector<64x64xf32>
    %cst_20 = arith.constant dense<0.000000e+00> : vector<2x64xf32>
    %24 = tpu.matmul %21, %23, %cst_20 {dimension_numbers = #tpu.dot_dimension_numbers<[1], [0], [0], [1], [0, 0, 1, 1], [], []>} : vector<2x64xf32>, vector<64x64xf32>, vector<2x64xf32> -> vector<2x64xf32>
    %c2_21 = arith.constant 2 : index
    %c0_22 = arith.constant 0 : index
    %c0_23 = arith.constant 0 : index
    %25 = vector.load %arg3[%c2_21, %c0_22, %c0_23] : memref<3x1x64xf32, #tpu.memory_space<vmem>>, vector<1x1x64xf32>
    %26 = vector.shape_cast %25 : vector<1x1x64xf32> to vector<1x64xf32>
    %27 = vector.broadcast %26 : vector<1x64xf32> to vector<2x64xf32>
    %28 = arith.addf %24, %27 : vector<2x64xf32>
    %cst_24 = arith.constant 0.000000e+00 : f32
    %29 = vector.broadcast %cst_24 : f32 to vector<2x64xf32>
    %30 = arith.maximumf %28, %29 : vector<2x64xf32>
    %c0_25 = arith.constant 0 : index
    %c0_26 = arith.constant 0 : index
    %31 = vector.load %arg4[%c0_25, %c0_26] : memref<2x64xf32, #tpu.memory_space<vmem>>, vector<2x64xf32>
    tpu.vector_store %arg4[%c0_25, %c0_26], %30 {strides = array<i32>} : memref<2x64xf32, #tpu.memory_space<vmem>>, vector<2x64xf32>,
    return
  }
  func.func @transform_0(%arg0: i32) -> (i32, i32, i32) {
    %c0_i32 = arith.constant 0 : i32
    %c0_i32_0 = arith.constant 0 : i32
    %c0_i32_1 = arith.constant 0 : i32
    return %arg0, %c0_i32, %c0_i32_0 : i32, i32, i32
  }
  func.func @transform_1(%arg0: i32) -> (i32, i32, i32) {
    %c0_i32 = arith.constant 0 : i32
    %c0_i32_0 = arith.constant 0 : i32
    %c0_i32_1 = arith.constant 0 : i32
    %c0_i32_2 = arith.constant 0 : i32
    return %c0_i32, %c0_i32_0, %c0_i32_1 : i32, i32, i32
  }
  func.func @transform_2(%arg0: i32) -> (i32, i32, i32) {
    %c0_i32 = arith.constant 0 : i32
    %c0_i32_0 = arith.constant 0 : i32
    %c0_i32_1 = arith.constant 0 : i32
    %c0_i32_2 = arith.constant 0 : i32
    return %c0_i32, %c0_i32_0, %c0_i32_1 : i32, i32, i32
  }
  func.func @transform_3(%arg0: i32) -> (i32, i32) {
    %c0_i32 = arith.constant 0 : i32
    %c0_i32_0 = arith.constant 0 : i32
    return %arg0, %c0_i32 : i32, i32
  }
}

</mosaic_0001>

<bundles_post_ra>
// kernel: tpu_custom_call.1
= control target key start
LH: loop header
LB: loop body
LE: loop exit
PB: predicated region body
PF: predicated region fallthrough
CT: control target
= control target key end

     0   :  { %8 = vsyncpa [#allocation3], 0  ;;  %s655_s0 = inlined_call_operand.hbm [shape: f32[2,8,64], index: 0, kind: input, shape index: {}]   ;;  %s656_s1 = inlined_call_operand.hbm [shape: f32[3,64,64], index: 1, kind: input, shape index: {}]   ;;  %s657_s2 = inlined_call_operand.vmem [shape: f32[3,1,64], index: 2, kind: input, shape index: {}]   ;;  %s658_s3 = inlined_call_operand.hbm [shape: f32[2,64], index: 3, kind: output, shape index: {}]  }
   0x1   :  { %9 = vsyncpa [#allocation6], 0 }
   0x2   :  { %10 = vsyncpa [#allocation4], 0  ;;  %s562_s12 = smov [#allocation2]   ;;  %s490_s16 = scalar_lea.hbm %s655_s0, 256 }
   0x3   :  { %s16_s13 = sshll.u32 %s562_s12, 4  ;;  %p491_p0 = scmp.ne.s32.totalorder %s655_s0, %s490_s16  ;;  %s17_s13 = int_to_ptr.vmem [resolvable:$true] %s16_s13 }
   0x4   :  { %p494_p1 = scmp.lt.u32.totalorder %s490_s16, %s655_s0 }
   0x6   :  { %p496_p2 = pnand %p494_p1, %p491_p0 }
   0x8   :  { %499 = shalt.err (!%p496_p2)
}
   0x9   :  { %s500_s21 = scalar_lea.vmem %s17_s13, 256  ;;  %p505_p4 = scmp.lt.s32.totalorder %s17_s13, %s17_s13 }
   0xa   :  { %p501_p3 = scmp.ne.s32.totalorder %s17_s13, %s500_s21  ;;  %p506_p5 = scmp.lt.s32.totalorder %s500_s21, %s500_s21 }
   0xc   :  { %p507_p6 = por %p506_p5, %p505_p4 }
   0xe   :  { %p508_p7 = pnand %p507_p6, %p501_p3 }
  0x10   :  { %511 = shalt.err (!%p508_p7)
}
  0x11   :  { %s563_s22 = smov 128   ;;  %s564_s23 = smov 8  }
  0x12   :  { %22 = dma.hbm_to_vmem [thread:$0]  %s655_s0, 256, %s17_s13, [#allocation3], %s563_s22, %s563_s22, %s564_s23  }
  0x13   :  { %s565_s26 = smov [#allocation5]   ;;  %s512_s30 = scalar_lea.hbm %s656_s1, 3072 }
  0x14   :  { %s28_s27 = sshll.u32 %s565_s26, 4  ;;  %p513_p8 = scmp.ne.s32.totalorder %s656_s1, %s512_s30  ;;  %s29_s27 = int_to_ptr.vmem [resolvable:$true] %s28_s27 }
  0x15   :  { %p516_p9 = scmp.lt.u32.totalorder %s512_s30, %s656_s1 }
  0x17   :  { %p518_p10 = pnand %p516_p9, %p513_p8 }
  0x19   :  { %521 = shalt.err (!%p518_p10)
}
  0x1a   :  { %s522_s8 = scalar_lea.vmem %s29_s27, 3072  ;;  %p527_p12 = scmp.lt.s32.totalorder %s29_s27, %s29_s27 }
  0x1b   :  { %p523_p11 = scmp.ne.s32.totalorder %s29_s27, %s522_s8  ;;  %p528_p13 = scmp.lt.s32.totalorder %s522_s8, %s522_s8 }
  0x1d   :  { %p529_p0 = por %p528_p13, %p527_p12 }
  0x1f   :  { %p530_p1 = pnand %p529_p0, %p523_p11 }
  0x21   :  { %533 = shalt.err (!%p530_p1)
}
  0x22   :  { %34 = dma.hbm_to_vmem [thread:$0]  %s656_s1, 3072, %s29_s27, [#allocation6], %s563_s22, %s563_s22, %s564_s23  }
  0x23   :  { %556 = dma.done.wait [#allocation3], 256  }
  0x24   :  { %557 = vsyncadd [#allocation3], 4294967040 }
  0x25   :  { %558 = dma.done.wait [#allocation6], 3072  }
  0x26   :  { %559 = vsyncadd [#allocation6], 4294964224  ;;  %v566_v0 = vmov 0.0|0.0   ;;  %vm567_vm0 = vmmov 0   ;;  %v568_v1 = vmov 0.0   ;;  %v62_v2 = vld [vmem:[#allocation5] sm:$0xff] }
  0x27   :  { %446 = vmatprep.subr.bf16.mxu0 %v566_v0  ;;  %405 = vmatprep.mubr.msk.f32.mxu0 %vm567_vm0, %v568_v1  ;;  %v63_v3 = vld [vmem:[#allocation5 + $0x8] sm:$0xff]  ;;  %v64_v4 = vld [vmem:[#allocation5 + $0x10] sm:$0xff]  ;;  %vm45_vm1 = vcmask 523264   ;;  %v65_v6 = vld [vmem:[#allocation5 + $0x18] sm:$0xff]  ;;  %vm79_vm2 = vcmask 1041409   ;;  %s569_s15 = smov [#allocation7]  }
  0x28   :  { %458 = vmatprep.subr.bf16.mxu1 %v566_v0  ;;  %424 = vmatprep.mubr.msk.f32.mxu1 %vm567_vm0, %v568_v1  ;;  %v447_v5 = vpack.c.bf16 %v63_v3, %v62_v2  ;;  %v66_v7 = vld [vmem:[#allocation5 + $0x20] sm:$0xff]  ;;  %v43_v8 = vld [vmem:[#allocation2] sm:$0xff]  ;;  %v450_v9 = vpack.c.bf16 %v65_v6, %v64_v4  ;;  %v44_v10 = vld [vmem:[#allocation2 + $0x8] sm:$0xff]  ;;  %s344_s16 = sshll.u32 %s569_s15, 4  ;;  %vm336_vm3 = vcmask 517120   ;;  %s345_s16 = int_to_ptr.vmem [resolvable:$true] %s344_s16 }
  0x29   :  { %v46_v11 = vsel %vm45_vm1, %v43_v8, 0.0  ;;  %v155_v12 = vld [vmem:[#allocation5 + $0x40] sm:$0xff]  ;;  %v156_v13 = vld [vmem:[#allocation5 + $0x48] sm:$0xff]  ;;  %v53_v16 = vsel %vm45_vm1, %v44_v10, 0.0  ;;  %v157_v18 = vld [vmem:[#allocation5 + $0x50] sm:$0xff]  ;;  %s534_s17 = scalar_lea.vmem %s345_s16, 32  ;;  %p539_p3 = scmp.lt.s32.totalorder %s345_s16, %s345_s16 }
  0x2a   :  { %448 = vmatpush3.bf16.msra.mxu0 %v447_v5  ;;  %v67_v14 = vld [vmem:[#allocation5 + $0x28] sm:$0xff]  ;;  %v47_v15 = vrot.slane %v46_v11, 4  ;;  %v459_v17 = vpack.c.bf16 %v156_v13, %v155_v12  ;;  %v158_v19 = vld [vmem:[#allocation5 + $0x58] sm:$0xff]  ;;  %v54_v20 = vrot.slane %v53_v16, 4  ;;  %v159_v25 = vld [vmem:[#allocation5 + $0x60] sm:$0xff]  ;;  %p535_p2 = scmp.ne.s32.totalorder %s345_s16, %s534_s17  ;;  %p540_p4 = scmp.lt.s32.totalorder %s534_s17, %s534_s17 }
  0x2b   :  { %449 = vmatprep.subr.bf16.mxu0 %v566_v0  ;;  %v462_v22 = vpack.c.bf16 %v158_v19, %v157_v18  ;;  %v453_v23 = vpack.c.bf16 %v67_v14, %v66_v7  ;;  %v160_v26 = vld [vmem:[#allocation5 + $0x68] sm:$0xff]  ;;  %v68_v27 = vld [vmem:[#allocation5 + $0x30] sm:$0xff]  ;;  %v69_v28 = vld [vmem:[#allocation5 + $0x38] sm:$0xff] }
  0x2c   :  { %v48_v21 = vadd.f32 %v47_v15, %v46_v11  ;;  %460 = vmatpush3.bf16.msra.mxu1 %v459_v17  ;;  %v55_v24 = vadd.f32 %v54_v20, %v53_v16  ;;  %v465_v32 = vpack.c.bf16 %v160_v26, %v159_v25  ;;  %v456_v33 = vpack.c.bf16 %v69_v28, %v68_v27  ;;  %v161_v42 = vld [vmem:[#allocation5 + $0x70] sm:$0xff]  ;;  %v162_v43 = vld [vmem:[#allocation5 + $0x78] sm:$0xff]  ;;  %v246_v45 = vld [vmem:[#allocation5 + $0x80] sm:$0xff]  ;;  %p541_p5 = por %p540_p4, %p539_p3 }
  0x2d   :  { %461 = vmatprep.subr.bf16.mxu1 %v566_v0  ;;  %v468_v44 = vpack.c.bf16 %v162_v43, %v161_v42  ;;  %v247_v46 = vld [vmem:[#allocation5 + $0x88] sm:$0xff]  ;;  %v248_v47 = vld [vmem:[#allocation5 + $0x90] sm:$0xff]  ;;  %v249_v49 = vld [vmem:[#allocation5 + $0x98] sm:$0xff] }
  0x2e   :  { %451 = vmatpush3.bf16.msra.mxu0 %v450_v9  ;;  %v49_v29 = vrot.slane %v48_v21, 2  ;;  %v56_v30 = vrot.slane %v55_v24, 2  ;;  %v471_v48 = vpack.c.bf16 %v247_v46, %v246_v45  ;;  %v474_v50 = vpack.c.bf16 %v249_v49, %v248_v47  ;;  %v250_v51 = vld [vmem:[#allocation5 + $0xa0] sm:$0xff]  ;;  %v251_v52 = vld [vmem:[#allocation5 + $0xa8] sm:$0xff]  ;;  %v354_v54 = vld [vmem:[%s657_s2] ss:$0 sm:$0xff]  ;;  %p542_p6 = pnand %p541_p5, %p535_p2 }
  0x2f   :  { %452 = vmatprep.subr.bf16.mxu0 %v566_v0  ;;  %v477_v53 = vpack.c.bf16 %v251_v52, %v250_v51  ;;  %v252_v59 = vld [vmem:[#allocation5 + $0xb0] sm:$0xff]  ;;  %v253_v60 = vld [vmem:[#allocation5 + $0xb8] sm:$0xff] }
  0x30   :  { %v50_v31 = vadd.f32 %v49_v29, %v48_v21  ;;  %463 = vmatpush3.bf16.msra.mxu1 %v462_v22  ;;  %v57_v34 = vadd.f32 %v56_v30, %v55_v24  ;;  %v480_v61 = vpack.c.bf16 %v253_v60, %v252_v59  ;;  %v357_v62 = vld [vmem:[%s657_s2 + $0x1] ss:$0 sm:$0xff]  ;;  %v360_v3 = vld [vmem:[%s657_s2 + $0x2] ss:$0 sm:$0xff] }
  0x31   :  { %464 = vmatprep.subr.bf16.mxu1 %v566_v0 }
  0x32   :  { %454 = vmatpush3.bf16.msra.mxu0 %v453_v23  ;;  %v51_v35 = vrot.slane %v50_v31, 1  ;;  %v58_v36 = vrot.slane %v57_v34, 1 }
  0x33   :  { %455 = vmatprep.subr.bf16.mxu0 %v566_v0 }
  0x34   :  { %v52_v37 = vadd.f32 %v51_v35, %v50_v31  ;;  %466 = vmatpush3.bf16.msra.mxu1 %v465_v32  ;;  %v59_v38 = vadd.f32 %v58_v36, %v57_v34 }
  0x35   :  { %467 = vmatprep.subr.bf16.mxu1 %v566_v0 }
  0x36   :  { %457 = vmatpush3.bf16.msra.mxu0 %v456_v33  ;;  %v60_v39 = vmul.f32 0.125, %v52_v37  ;;  %v61_v40 = vmul.f32 0.125, %v59_v38 }
  0x37   :  { %470 = vmatprep.subr.bf16.mxu0 %v566_v0 }
  0x38   :  { %v80_v41 = vsel %vm79_vm2, %v61_v40, %v60_v39  ;;  %469 = vmatpush3.bf16.msra.mxu1 %v468_v44 }
  0x39   :  { %406 = vmatmul.mubr.msk.f32.vlgmr.msra.gmra.mrb[0].mxu0 %vm45_vm1, %v80_v41 }
  0x3a   :  { %443 = vmatprep.mubr.msk.f32.mxu0 %vm567_vm0, %v568_v1  ;;  %472 = vmatpush3.bf16.msra.mxu0 %v471_v48 }
  0x3b   :  { %473 = vmatprep.subr.bf16.mxu0 %v566_v0 }
  0x3e   :  { %475 = vmatpush3.bf16.msra.mxu0 %v474_v50 }
  0x3f   :  { %476 = vmatprep.subr.bf16.mxu0 %v566_v0 }
  0x42   :  { %478 = vmatpush3.bf16.msra.mxu0 %v477_v53 }
  0x43   :  { %479 = vmatprep.subr.bf16.mxu0 %v566_v0 }
  0x46   :  { %481 = vmatpush3.bf16.msra.mxu0 %v480_v61 }
 0x10c   :  { %v149_v55 = vpop.f32.mrb[0].mxu0 }
 0x10d   :  { %v150_v56 = vadd.f32 %v354_v54, %v149_v55  ;;  %v407_v57 = vpop.f32.mrb[1].mxu0 }
 0x10f   :  { %v153_v58 = vmax.f32 %v150_v56, 0.0 }
 0x111   :  { %425 = vmatmul.mubr.msk.f32.vlgmr.msra.gmra.mrb[0].mxu1 %vm45_vm1, %v153_v58 }
 0x1e4   :  { %v240_v63 = vpop.f32.mrb[0].mxu1 }
 0x1e5   :  { %v241_v0 = vadd.f32 %v357_v62, %v240_v63  ;;  %v426_v1 = vpop.f32.mrb[1].mxu1 }
 0x1e7   :  { %v244_v2 = vmax.f32 %v241_v0, 0.0 }
 0x1e9   :  { %444 = vmatmul.mubr.msk.f32.vlgmr.msra.gmra.mrb[2].mxu0 %vm45_vm1, %v244_v2 }
 0x2bc   :  { %v331_v4 = vpop.f32.mrb[2].mxu0 }
 0x2bd   :  { %v332_v5 = vadd.f32 %v360_v3, %v331_v4  ;;  %v445_v6 = vpop.f32.mrb[3].mxu0 }
 0x2bf   :  { %v335_v7 = vmax.f32 %v332_v5, 0.0 }
 0x2c1   :  { %337 = vst.msk [vmem:[#allocation7] sm:$0x3] %vm336_vm3, %v335_v7 }
 0x2c2   :  { %545 = shalt.err (!%p542_p6)
}
 0x2c3   :  { %s546_s2 = scalar_lea.hbm %s658_s3, 32 }
 0x2c4   :  { %p547_p7 = scmp.ne.s32.totalorder %s658_s3, %s546_s2  ;;  %p550_p8 = scmp.lt.u32.totalorder %s546_s2, %s658_s3 }
 0x2c6   :  { %p552_p9 = pnand %p550_p8, %p547_p7 }
 0x2c8   :  { %555 = shalt.err (!%p552_p9)
}
 0x2c9   :  { %347 = dma.vmem_to_hbm [thread:$0]  %s345_s16, 32, %s658_s3, [#allocation4]  }
 0x2ca   :  { %560 = dma.done.wait [#allocation4], 32  }
 0x2cb   :  { %561 = vsyncadd [#allocation4], 4294967264 }
 0x2cc   :  { %351 = vsyncpa [#allocation3], 1 }
 0x2cd   :  { %352 = vsyncpa [#allocation6], 1 }
 0x2ce   :  { %353 = vsyncpa [#allocation4], 1 }

</bundles_post_ra>
